<compile_context>
chip_gen: v7x
topology: tpu7x:2x2x1
jax: 0.10.0
libtpu: 0.0.40
codegen_flags: <defaults>
</compile_context>

<pallas_src>
import functools

import jax
import jax.numpy as jnp
from jax import lax
from jax.experimental import pallas as pl
from jax.experimental.pallas import tpu as pltpu


def _mlp_proj_kernel(x_ref, w_ref, b_ref, o_ref):
    # x_ref: (C, t)      channel-major slab of one image's tokens
    # w_ref: (C, E_pad)  Linear weight, transposed, possibly bf16
    # b_ref: (1, E_pad)  bias, f32
    # o_ref: (t, E_pad)  token-major output block
    x = x_ref[...]
    if x.dtype != w_ref.dtype:
        # Cast the activation block to the MXU compute dtype in-kernel (VPU
        # work, hidden under the DMA) rather than in the wrapper.
        x = x.astype(w_ref.dtype)
    # Contract over the channel axis of both operands: the NCHW -> token
    # transpose is fused into the MXU matmul.  Accumulate in f32.
    acc = lax.dot_general(
        x,
        w_ref[...],
        dimension_numbers=(((0,), (0,)), ((), ())),
        preferred_element_type=jnp.float32,
    )
    o_ref[...] = (acc + b_ref[...]).astype(o_ref.dtype)


def _pick_token_tile(HW, B, t_max, min_grid=4):
    """Token-tile size along H*W.

    The x block's lane dim is the token dim, so t must be a multiple of 128
    or equal to HW.  Preferences, in order: no masked tail (t divides HW);
    enough grid steps that both v7x TensorCores get work (B * ceil(HW/t) >=
    min_grid); and as large as possible to amortize the ~0.35us per-step cost.
    """
    t_max = min(t_max, HW)
    if HW % 128 != 0 or t_max < 128:
        return HW  # only a full-extent block is legal on the lane dim
    cands = list(range((t_max // 128) * 128, 0, -128))  # biggest first
    for need_div, need_par in ((True, True), (True, False),
                               (False, True), (False, False)):
        for t in cands:
            if need_div and HW % t != 0:
                continue
            if need_par and B * pl.cdiv(HW, t) < min_grid:
                continue
            return t
    return HW


@functools.partial(
    jax.jit, static_argnames=("t_hw", "compute_dtype", "out_dtype"))
def mlp_forward(x, w, b, *, t_hw=1024, compute_dtype=jnp.bfloat16,
                out_dtype=None):
    """x: (B, C, H, W); w: (C, E) (PyTorch weight transposed); b: (E,).

    Returns (B, H*W, E), matching MLP.forward of the PyTorch module.
    """
    B, C, H, W = x.shape
    E = w.shape[1]
    HW = H * W
    out_dtype = x.dtype if out_dtype is None else out_dtype

    # Lane-dense output: pad the embed dim to a multiple of 128 so stores are
    # unmasked vst; slice the pad off afterwards.
    E_pad = ((E + 127) // 128) * 128
    if E_pad != E:
        w = jnp.pad(w, ((0, 0), (0, E_pad - E)))
        b = jnp.pad(b, (0, E_pad - E))
    # Weight in the MXU compute dtype (one-time cast of a tiny tensor);
    # bias stays f32 so the bias add happens in f32.
    w = w.astype(compute_dtype)
    b2d = b.astype(jnp.float32).reshape(1, E_pad)

    # Free reshape only -- NO transpose (and no dtype convert of the big
    # activation) in the wrapper.
    x3 = x.reshape(B, C, HW)

    t = _pick_token_tile(HW, B, t_hw)
    grid = (B, pl.cdiv(HW, t))

    out = pl.pallas_call(
        _mlp_proj_kernel,
        out_shape=jax.ShapeDtypeStruct((B, HW, E_pad), out_dtype),
        grid=grid,
        in_specs=[
            # (C, t) slab of image `bi`, token window `ti` (batch squeezed).
            pl.BlockSpec((None, C, t), lambda bi, ti: (bi, 0, ti)),
            # Full weight / bias, resident across the grid.
            pl.BlockSpec((C, E_pad), lambda bi, ti: (0, 0)),
            pl.BlockSpec((1, E_pad), lambda bi, ti: (0, 0)),
        ],
        out_specs=pl.BlockSpec((None, t, E_pad), lambda bi, ti: (bi, ti, 0)),
        compiler_params=pltpu.CompilerParams(
            dimension_semantics=("parallel", "parallel"),
        ),
    )(x3, w, b2d)

    if E_pad != E:
        out = out[:, :, :E]
    return out


if __name__ == "__main__":
    # Small shapes consistent with the module: MLP(input_dim=C, embed_dim=E).
    B, C, H, W = 2, 32, 16, 16
    E = 64

    key = jax.random.PRNGKey(0)
    kx, kw, kb = jax.random.split(key, 3)

    x = jax.random.normal(kx, (B, C, H, W), dtype=jnp.float32)
    # PyTorch weight is (E, C); we store its transpose (C, E) for the kernel.
    w = jax.random.normal(kw, (C, E), dtype=jnp.float32) * (1.0 / jnp.sqrt(C))
    b = jax.random.normal(kb, (E,), dtype=jnp.float32) * 0.01

    out = mlp_forward(x, w, b)
    jax.block_until_ready(out)

    # Reference: same semantics as the PyTorch forward (f32).  Tolerance is
    # loosened because the kernel multiplies in bf16 (f32 accumulation).
    x_tok = jnp.transpose(x.reshape(B, C, H * W), (0, 2, 1))
    ref = x_tok @ w + b
    assert out.shape == (B, H * W, E), out.shape
    assert jnp.allclose(out, ref, atol=3e-2, rtol=3e-2)

    print("KERNEL_OK")
</pallas_src>

<mosaic_0001>
module attributes {stable_mosaic.version = 11 : i64} {
  func.func @_mlp_proj_kernel(%arg0: i32, %arg1: i32, %arg2: memref<1x32x128xf32, #tpu.memory_space<vmem>>, %arg3: memref<32x128xbf16, #tpu.memory_space<vmem>>, %arg4: memref<1x128xf32, #tpu.memory_space<vmem>>, %arg5: memref<1x128x128xf32, #tpu.memory_space<vmem>>) attributes {dimension_semantics = [#tpu.dimension_semantics<parallel>, #tpu.dimension_semantics<parallel>], iteration_bounds = array<i64: 2, 2>, scalar_prefetch = 0 : i64, scratch_operands = 0 : i64, tpu.core_type = #tpu.core_type<tc>, window_params = [{transform_indices = @transform_0, window_bounds = array<i64: 1, 32, 128>}, {pipeline_mode = #tpu.pipeline_mode<synchronous>, transform_indices = @transform_1, window_bounds = array<i64: 32, 128>}, {pipeline_mode = #tpu.pipeline_mode<synchronous>, transform_indices = @transform_2, window_bounds = array<i64: 1, 128>}, {transform_indices = @transform_3, window_bounds = array<i64: 1, 128, 128>}]} {
    %c0 = arith.constant 0 : index
    %c0_0 = arith.constant 0 : index
    %c0_1 = arith.constant 0 : index
    %0 = vector.load %arg2[%c0, %c0_0, %c0_1] : memref<1x32x128xf32, #tpu.memory_space<vmem>>, vector<1x32x128xf32>
    %1 = vector.shape_cast %0 : vector<1x32x128xf32> to vector<32x128xf32>
    %2 = arith.truncf %1 : vector<32x128xf32> to vector<32x128xbf16>
    %c0_2 = arith.constant 0 : index
    %c0_3 = arith.constant 0 : index
    %3 = vector.load %arg3[%c0_2, %c0_3] : memref<32x128xbf16, #tpu.memory_space<vmem>>, vector<32x128xbf16>
    %cst = arith.constant dense<0.000000e+00> : vector<128x128xf32>
    %4 = tpu.matmul %2, %3, %cst {dimension_numbers = #tpu.dot_dimension_numbers<[0], [0], [1], [1], [0, 1, 1, 1], [], []>} : vector<32x128xbf16>, vector<32x128xbf16>, vector<128x128xf32> -> vector<128x128xf32>
    %c0_4 = arith.constant 0 : index
    %c0_5 = arith.constant 0 : index
    %5 = vector.load %arg4[%c0_4, %c0_5] : memref<1x128xf32, #tpu.memory_space<vmem>>, vector<1x128xf32>
    %6 = vector.broadcast %5 : vector<1x128xf32> to vector<128x128xf32>
    %7 = arith.addf %4, %6 : vector<128x128xf32>
    %c0_6 = arith.constant 0 : index
    %c0_7 = arith.constant 0 : index
    %c0_8 = arith.constant 0 : index
    %8 = vector.load %arg5[%c0_6, %c0_7, %c0_8] : memref<1x128x128xf32, #tpu.memory_space<vmem>>, vector<1x128x128xf32>
    %9 = vector.shape_cast %8 : vector<1x128x128xf32> to vector<128x128xf32>
    %10 = vector.shape_cast %7 : vector<128x128xf32> to vector<1x128x128xf32>
    tpu.vector_store %arg5[%c0_6, %c0_7, %c0_8], %10 {strides = array<i32>} : memref<1x128x128xf32, #tpu.memory_space<vmem>>, vector<1x128x128xf32>,
    return
  }
  func.func @transform_0(%arg0: i32, %arg1: i32) -> (i32, i32, i32) {
    %c0_i32 = arith.constant 0 : i32
    %c0_i32_0 = arith.constant 0 : i32
    return %arg0, %c0_i32, %arg1 : i32, i32, i32
  }
  func.func @transform_1(%arg0: i32, %arg1: i32) -> (i32, i32) {
    %c0_i32 = arith.constant 0 : i32
    %c0_i32_0 = arith.constant 0 : i32
    %c0_i32_1 = arith.constant 0 : i32
    return %c0_i32, %c0_i32_0 : i32, i32
  }
  func.func @transform_2(%arg0: i32, %arg1: i32) -> (i32, i32) {
    %c0_i32 = arith.constant 0 : i32
    %c0_i32_0 = arith.constant 0 : i32
    %c0_i32_1 = arith.constant 0 : i32
    return %c0_i32, %c0_i32_0 : i32, i32
  }
  func.func @transform_3(%arg0: i32, %arg1: i32) -> (i32, i32, i32) {
    %c0_i32 = arith.constant 0 : i32
    %c0_i32_0 = arith.constant 0 : i32
    return %arg0, %arg1, %c0_i32 : i32, i32, i32
  }
}

</mosaic_0001>

<bundles_post_ra>
// kernel: mlp_forward.1
= control target key start
LH: loop header
LB: loop body
LE: loop exit
PB: predicated region body
PF: predicated region fallthrough
CT: control target
= control target key end

     0   :  { %s714_s12 = smov 0   ;;  %s716_s13 = smov 0   ;;  %s839_s0 = inlined_call_operand.vmem [shape: f32[2,32,256], index: 0, kind: input, shape index: {}]   ;;  %s840_s1 = inlined_call_operand.vmem [shape: bf16[32,128], index: 1, kind: input, shape index: {}]   ;;  %s841_s2 = inlined_call_operand.vmem [shape: f32[1,128], index: 2, kind: input, shape index: {}]   ;;  %s842_s3 = inlined_call_operand.vmem [shape: f32[2,256,128], index: 3, kind: output, shape index: {}]  }
   0x1   :  { %s718_s14 = smov 0   ;;  %s720_s15 = smov 0  }
   0x2   :  { %s722_s16 = smov 0   ;;  %s724_s17 = smov 0  }
   0x3   :  { %s726_s18 = smov 0  }
   0x4 LB: > { %s22_s19 = sadd.s32 1, %s684_s16  ;;  %s25_s20 = sadd.s32 1, %s688_s17  ;;  %s692_s18 = sphi %s726_s18, %s13_s18   ;;  %s688_s17 = sphi %s724_s17, %s848_s17   ;;  %s684_s16 = sphi %s722_s16, %s847_s16   ;;  %s680_s15 = sphi %s720_s15, %s846_s15   ;;  %s676_s14 = sphi %s718_s14, %s845_s14   ;;  %s672_s13 = sphi %s716_s13, %s844_s13   ;;  %s668_s12 = sphi %s714_s12, %s843_s12  }
   0x5   : > { %p23_p0 = scmp.ge.s32.totalorder %s22_s19, 2  ;;  %p41_p1 = scmp.ne.s32.totalorder %s672_s13, %s668_s12 }
   0x6   : > { %p42_p2 = scmp.eq.s32.totalorder %s692_s18, 0  ;;  %s34_s24 = sadd.s32 1, %s672_s13 }
   0x7   : > { %s850_s19 = smov (%p23_p0, %s22_s19), 0  ;;  %s852_s20 = smov (!%p23_p0, %s25_s20), %s688_s17 }
   0x8   : > { %p43_p3 = por %p42_p2, %p41_p1  ;;  %p27_p4 = scmp.ge.s32.totalorder %s852_s20, 2 }
   0x9   : > { %s30_s21 = ssub.s32 %s684_s16, %s850_s19  ;;  %p523_p6 = scmp.ge.s32.totalorder %s692_s18, 4 }
   0xa   : > { %s854_s20 = smov (%p27_p4, %s852_s20), 0 }
   0xb   : > { %s29_s22 = ssub.s32 %s688_s17, %s854_s20  ;;  %143 = sbr.rel (%p523_p6) target bundleno = 26 (0x1a), region = 24 }
   0xc   : > { %s31_s23 = sor.u32 %s30_s21, %s29_s22 }
   0xd   : > { %p32_p5 = scmp.eq.s32.totalorder %s31_s23, 0 }
   0xf   : > { %s765_s25 = scalar_select %p32_p5, %s672_s13, %s34_s24  }
  0x12   : > { %146 = sbr.rel (!%p43_p3) target bundleno = 26 (0x1a), region = 28  ;;  %s148_s26 = sand.u32 (%p43_p3), 1, %s672_s13  }
  0x13   : > { %s525_s27 = sshll.u32 (%p43_p3), %s688_s17, 3  ;;  %s524_s28 = sshll.u32 (%p43_p3), %s148_s26, 5 }
  0x14   : > { %s152_s29 = sadd.s32 (%p43_p3), %s684_s16, %s525_s27  ;;  %s150_s7 = scalar_lea.vmem (%p43_p3), [#allocation2], %s524_s28 }
  0x15   : > { %s526_s30 = sshll.u32 (%p43_p3), %s152_s29, 3 }
  0x16   : > { %s154_s6 = scalar_lea.vmem (%p43_p3), %s839_s0, %s526_s30 }
  0x17   : > { %v188_v0 = vld [vmem:[%s154_s6] sm:$0xff] (%p43_p3)  ;;  %v190_v1 = vld [vmem:[%s154_s6 + $0x10] sm:$0xff] (%p43_p3) }
  0x18   : > { %v192_v2 = vld [vmem:[%s154_s6 + $0x20] sm:$0xff] (%p43_p3)  ;;  %189 = vst [vmem:[%s150_s7] sm:$0xff] (%p43_p3), %v188_v0  ;;  %191 = vst [vmem:[%s150_s7 + $0x8] sm:$0xff] (%p43_p3), %v190_v1  ;;  %v194_v3 = vld [vmem:[%s154_s6 + $0x30] sm:$0xff] (%p43_p3) }
  0x19   : > { %193 = vst [vmem:[%s150_s7 + $0x10] sm:$0xff] %v192_v2  ;;  %195 = vst [vmem:[%s150_s7 + $0x18] sm:$0xff] %v194_v3 }
  0x1a PF: > { %p527_p7 = scmp.ge.s32.totalorder %s692_s18, 1  ;;  %p200_p8 = scmp.lt.s32.totalorder %s692_s18, 5 }
  0x1c   : > { %p201_p9 = pnand %p527_p7, %p200_p8 }
  0x1d   : > { %s207_s8 = sand.u32 (!%p201_p9), 1, %s668_s12   ;;  %v636_v4 = vld [vmem:[%s840_s1] sm:$0xff] (!%p201_p9)   ;;  %v637_v5 = vld [vmem:[%s840_s1 + $0x8] sm:$0xff] (!%p201_p9)   ;;  %vm290_vm0 = vcmask (!%p201_p9), 261120   ;;  %s529_s12 = sshll.u32 (!%p201_p9), %s676_s14, 4 }
  0x1e   : > { %204 = sbr.rel (%p201_p9) target bundleno = 384 (0x180), region = 66  ;;  %s528_s9 = sshll.u32 (!%p201_p9), %s207_s8, 5  ;;  %555 = vmatprep.subr.bf16.mxu0 (!%p201_p9), %v636_v4  ;;  %575 = vmatprep.subr.bf16.mxu1 (!%p201_p9), %v636_v4  ;;  %v532_v20 = vld [vmem:[%s841_s2] ss:$0 sm:$0xff] (!%p201_p9) }
  0x1f   : > { %s209_s23 = scalar_lea.vmem (!%p201_p9), [#allocation2], %s528_s9  ;;  %556 = vmatpush3.bf16.msra.mxu0 (!%p201_p9), %v636_v4  ;;  %577 = vmatpush3.bf16.msra.mxu1 (!%p201_p9), %v636_v4  ;;  %p235_p10 = scmp.lt.s32.totalorder (!%p201_p9), %s680_s15, 1 }
  0x20   : > { %v245_v6 = vld [vmem:[%s209_s23] sm:$0xff] (!%p201_p9)  ;;  %v246_v7 = vld [vmem:[%s209_s23 + $0x8] sm:$0xff] (!%p201_p9)  ;;  %v247_v8 = vld [vmem:[%s209_s23 + $0x10] sm:$0xff] (!%p201_p9)  ;;  %557 = vmatprep.subr.bf16.mxu0 (!%p201_p9), %v637_v5  ;;  %576 = vmatprep.subr.bf16.mxu1 (!%p201_p9), %v637_v5  ;;  %p237_p11 = scmp.lt.s32.totalorder (!%p201_p9), %s529_s12, 31 }
  0x21   : > { %v249_v9 = vpack.c.bf16 (!%p201_p9), %v246_v7, %v245_v6  ;;  %v248_v10 = vld [vmem:[%s209_s23 + $0x18] sm:$0xff] (!%p201_p9) }
  0x22   : > { %v250_v11 = vpack.c.bf16 (!%p201_p9), %v248_v10, %v247_v8 }
  0x23   : > { %262 = vxpose.xlu0.c.b16.start [1/2] (short) (!%p201_p9), %v249_v9, 128  ;;  %558 = vmatpush3.bf16.msra.mxu0 (!%p201_p9), %v637_v5 }
  0x24   : > { %578 = vmatpush3.bf16.msra.mxu1 (!%p201_p9), %v637_v5 }
  0x25   : > { %s856_s15 = smov (!%p235_p10, %s680_s15), 1  ;;  %s858_s12 = smov (!%p237_p11, %s529_s12), 31 }
  0x26   : > { %s530_s24 = sshll.u32 %s856_s15, 5 }
  0x27   : > { %263 = vxpose.xlu0.c.b16.end [2/2] (short) %v250_v11, 128  ;;  %s240_s26 = sadd.s32 %s530_s24, %s858_s12 }
  0x28   : > { %s531_s27 = sshll.u32 %s240_s26, 3 }
  0x29   : > { %s800_s5 = scalar_lea.vmem %s842_s3, %s531_s27 }
  0x89   : > { %v270_v12 = vpop.trf.xlu0 }
  0x8a   : > { %559 = vmatprep.mubr.msk.bf16.mxu0 %vm290_vm0, %v270_v12 }
  0x8d   : > { %v271_v13 = vpop.trf.xlu0 }
  0x8e   : > { %560 = vmatmul.mubr.msk.bf16.vlgmr.msra.gmra.mrb[0].mxu0 %vm290_vm0, %v271_v13 }
  0x91   : > { %v272_v14 = vpop.trf.xlu0 }
  0x92   : > { %563 = vmatprep.mubr.msk.bf16.mxu0 %vm290_vm0, %v272_v14 }
  0x95   : > { %v273_v15 = vpop.trf.xlu0 }
  0x96   : > { %564 = vmatmul.mubr.msk.bf16.gmra.mrb[4].mxu0 %vm290_vm0, %v273_v15 }
  0x99   : > { %v274_v16 = vpop.trf.xlu0 }
  0x9a   : > { %567 = vmatprep.mubr.msk.bf16.mxu1 %vm290_vm0, %v274_v16 }
  0x9d   : > { %v275_v17 = vpop.trf.xlu0 }
  0x9e   : > { %568 = vmatmul.mubr.msk.bf16.vlgmr.msra.gmra.mrb[0].mxu1 %vm290_vm0, %v275_v17 }
  0xa1   : > { %v276_v18 = vpop.trf.xlu0 }
  0xa2   : > { %571 = vmatprep.mubr.msk.bf16.mxu1 %vm290_vm0, %v276_v18 }
  0xa5   : > { %v277_v19 = vpop.trf.xlu0 }
  0xa6   : > { %572 = vmatmul.mubr.msk.bf16.gmra.mrb[4].mxu1 %vm290_vm0, %v277_v19 }
 0x161   : > { %v561_v21 = vpop.f32.mrb[0].mxu0 }
 0x162   : > { %v358_v22 = vadd.f32 %v561_v21, %v532_v20  ;;  %v349_v23 = vpop.f32.mrb[1].mxu0 }
 0x163   : > { %v350_v24 = vadd.f32 %v532_v20, %v349_v23  ;;  %v562_v25 = vpop.f32.mrb[2].mxu0 }
 0x164   : > { %414 = vst [vmem:[%s800_s5 + $0x10] sm:$0xff] %v358_v22  ;;  %v361_v26 = vadd.f32 %v562_v25, %v532_v20  ;;  %v352_v27 = vpop.f32.mrb[3].mxu0 }
 0x165   : > { %412 = vst [vmem:[%s800_s5] sm:$0xff] %v350_v24  ;;  %v353_v28 = vadd.f32 %v532_v20, %v352_v27 }
 0x166   : > { %415 = vst [vmem:[%s800_s5 + $0x18] sm:$0xff] %v361_v26 }
 0x167   : > { %413 = vst [vmem:[%s800_s5 + $0x8] sm:$0xff] %v353_v28 }
 0x169   : > { %v565_v29 = vpop.f32.mrb[4].mxu0 }
 0x16a   : > { %v374_v30 = vadd.f32 %v565_v29, %v532_v20  ;;  %v365_v31 = vpop.f32.mrb[5].mxu0 }
 0x16b   : > { %v366_v32 = vadd.f32 %v532_v20, %v365_v31  ;;  %v566_v33 = vpop.f32.mrb[6].mxu0 }
 0x16c   : > { %418 = vst [vmem:[%s800_s5 + $0x30] sm:$0xff] %v374_v30  ;;  %v377_v34 = vadd.f32 %v566_v33, %v532_v20  ;;  %v368_v35 = vpop.f32.mrb[7].mxu0 }
 0x16d   : > { %416 = vst [vmem:[%s800_s5 + $0x20] sm:$0xff] %v366_v32  ;;  %v369_v36 = vadd.f32 %v532_v20, %v368_v35 }
 0x16e   : > { %419 = vst [vmem:[%s800_s5 + $0x38] sm:$0xff] %v377_v34 }
 0x16f   : > { %417 = vst [vmem:[%s800_s5 + $0x28] sm:$0xff] %v369_v36 }
 0x171   : > { %v569_v37 = vpop.f32.mrb[0].mxu1 }
 0x172   : > { %v390_v38 = vadd.f32 %v569_v37, %v532_v20  ;;  %v381_v39 = vpop.f32.mrb[1].mxu1 }
 0x173   : > { %v382_v40 = vadd.f32 %v532_v20, %v381_v39  ;;  %v570_v41 = vpop.f32.mrb[2].mxu1 }
 0x174   : > { %422 = vst [vmem:[%s800_s5 + $0x50] sm:$0xff] %v390_v38  ;;  %v393_v42 = vadd.f32 %v570_v41, %v532_v20  ;;  %v384_v43 = vpop.f32.mrb[3].mxu1 }
 0x175   : > { %420 = vst [vmem:[%s800_s5 + $0x40] sm:$0xff] %v382_v40  ;;  %v385_v44 = vadd.f32 %v532_v20, %v384_v43 }
 0x176   : > { %423 = vst [vmem:[%s800_s5 + $0x58] sm:$0xff] %v393_v42 }
 0x177   : > { %421 = vst [vmem:[%s800_s5 + $0x48] sm:$0xff] %v385_v44 }
 0x179   : > { %v573_v45 = vpop.f32.mrb[4].mxu1 }
 0x17a   : > { %v406_v46 = vadd.f32 %v573_v45, %v532_v20  ;;  %v397_v47 = vpop.f32.mrb[5].mxu1 }
 0x17b   : > { %v398_v48 = vadd.f32 %v532_v20, %v397_v47  ;;  %v574_v49 = vpop.f32.mrb[6].mxu1 }
 0x17c   : > { %426 = vst [vmem:[%s800_s5 + $0x70] sm:$0xff] %v406_v46  ;;  %v409_v50 = vadd.f32 %v574_v49, %v532_v20  ;;  %v400_v51 = vpop.f32.mrb[7].mxu1 }
 0x17d   : > { %424 = vst [vmem:[%s800_s5 + $0x60] sm:$0xff] %v398_v48  ;;  %v401_v52 = vadd.f32 %v532_v20, %v400_v51 }
 0x17e   : > { %427 = vst [vmem:[%s800_s5 + $0x78] sm:$0xff] %v409_v50 }
 0x17f   : > { %425 = vst [vmem:[%s800_s5 + $0x68] sm:$0xff] %v401_v52 }
 0x180 PF: > { %s13_s18 = sadd.s32 1, %s692_s18   ;;  %s843_s12 = smov %s672_s13 }
 0x181   : > { %p10_p12 = scmp.ge.s32.totalorder %s13_s18, 6   ;;  %s844_s13 = smov %s765_s25 }
 0x182   : > { %s845_s14 = smov %s684_s16  ;;  %s846_s15 = smov %s688_s17 }
 0x183   : > { %s847_s16 = smov %s850_s19  ;;  %s848_s17 = smov %s854_s20 }
 0x184   :  { %12 = sbr.rel (!%p10_p12) target bundleno = 4 (0x4), region = 105 }

</bundles_post_ra>
